<compile_context>
chip_gen: v7x
topology: tpu7x:2x2x1
jax: 0.10.0
libtpu: 0.0.40
codegen_flags: <defaults>
</compile_context>

<pallas_src>
import functools
import math

import jax
import jax.numpy as jnp
from jax.experimental import pallas as pl
from jax.experimental.pallas import tpu as pltpu

LANE = 128
# Reduction path: 2 input streams x 2 buffers x (8192,128) f32 = 16 MiB VMEM.
# 'none' path:    3 streams     x 2 buffers x (4096,128) f32 = 12 MiB VMEM.
BLOCK_ROWS_REDUCE = 8192
BLOCK_ROWS_NONE = 4096
VMEM_LIMIT_BYTES = 32 * 1024 * 1024  # explicit so v5e (16 MiB default) also fits


def _cdiv(a: int, b: int) -> int:
    return -(-a // b)


def _round_up(a: int, m: int) -> int:
    return _cdiv(a, m) * m


def _pick_block_rows(rows: int, cap: int) -> int:
    """Largest row-tile <= cap that is a multiple of 8 (sublane count)."""
    return min(cap, _round_up(rows, 8))


# ---------------------------------------------------------------------------
# Reduction ('mean'/'sum') kernel: lane-wise partial sums of squared diffs.
# Grid = (n_split, tiles_per_split); split axis 'parallel', tile axis
# 'arbitrary'.  The output block (8, 128) is resident across the tile axis
# and acts as a full-vreg accumulator.
# ---------------------------------------------------------------------------
def _rmse_partial_kernel(yh_ref, yt_ref, out_ref, *, block_rows,
                         tiles_per_split, valid_rows):
    s = pl.program_id(0)
    k = pl.program_id(1)

    @pl.when(k == 0)
    def _init():
        out_ref[...] = jnp.zeros_like(out_ref)

    d = yh_ref[...].astype(jnp.float32) - yt_ref[...].astype(jnp.float32)
    sq = d * d

    def _fold(x):
        # (block_rows, 128) -> (block_rows//8, 8, 128) -> (8, 128): full-vreg
        # VPU adds only, no sub-vreg masked stores, no XLU sublane reduce.
        return x.reshape(block_rows // 8, 8, LANE).sum(axis=0)

    # Unclamped logical tile index: also zeroes phantom tiles of the 2-way
    # split (whose DMA block index was clamped in the index_map).
    t = s * tiles_per_split + k
    straddles = (t + 1) * block_rows > valid_rows

    @pl.when(straddles)
    def _masked():
        row0 = t * block_rows
        row_ids = row0 + jax.lax.broadcasted_iota(jnp.int32, sq.shape, 0)
        out_ref[...] += _fold(jnp.where(row_ids < valid_rows, sq, 0.0))

    @pl.when(jnp.logical_not(straddles))
    def _unmasked():
        out_ref[...] += _fold(sq)


# ---------------------------------------------------------------------------
# Elementwise kernel for reduction='none': max(|yh - yt|, sqrt(eps)).
# (== sqrt(clamp((yh - yt)^2, eps)) up to 1 ulp.)
# ---------------------------------------------------------------------------
def _rmse_none_kernel(yh_ref, yt_ref, out_ref, *, sqrt_eps):
    d = yh_ref[...].astype(jnp.float32) - yt_ref[...].astype(jnp.float32)
    out_ref[...] = jnp.maximum(jnp.abs(d), jnp.float32(sqrt_eps)).astype(out_ref.dtype)


def _split_flat(x):
    """Flatten; return (main (rows,128) slab or None, tail 1-D or None, rows, rem)."""
    n = int(x.size)
    flat = jnp.ravel(x)
    rows = n // LANE
    rem = n - rows * LANE
    main = None
    if rows > 0:
        if rem == 0:
            main = flat.reshape(rows, LANE)          # free reshape, no copy
        else:
            main = flat[: rows * LANE].reshape(rows, LANE)
    tail = flat[rows * LANE:] if rem > 0 else None
    return main, tail, rows, rem


def rmse_loss(y_hat, y_true, *, reduction: str = "mean", eps: float = 1e-8):
    """Pallas-TPU implementation of RMSELoss.forward."""
    if reduction not in ("mean", "sum", "none"):
        raise ValueError(f"unsupported reduction: {reduction}")

    orig_shape = y_hat.shape
    n = int(y_hat.size)
    out_dtype = y_hat.dtype
    sqrt_eps = math.sqrt(eps)

    yh_main, yh_tail, rows, rem = _split_flat(y_hat)
    yt_main, yt_tail, _, _ = _split_flat(y_true)

    # ---------------------- reduction = 'none' ----------------------------
    if reduction == "none":
        pieces = []
        if rows > 0:
            block_rows = _pick_block_rows(rows, BLOCK_ROWS_NONE)
            tiles = _cdiv(rows, block_rows)
            tile_spec = pl.BlockSpec((block_rows, LANE), lambda i: (i, 0))
            out2d = pl.pallas_call(
                functools.partial(_rmse_none_kernel, sqrt_eps=sqrt_eps),
                out_shape=jax.ShapeDtypeStruct((rows, LANE), out_dtype),
                grid_spec=pltpu.PrefetchScalarGridSpec(
                    num_scalar_prefetch=0,
                    grid=(tiles,),
                    in_specs=[tile_spec, tile_spec],
                    out_specs=tile_spec,
                ),
                compiler_params=pltpu.CompilerParams(
                    dimension_semantics=("parallel",),
                    vmem_limit_bytes=VMEM_LIMIT_BYTES),
            )(yh_main, yt_main)
            if rem == 0:
                return out2d.reshape(orig_shape)     # free reshape
            pieces.append(out2d.reshape(-1))
        if rem > 0:
            td = yh_tail.astype(jnp.float32) - yt_tail.astype(jnp.float32)
            pieces.append(
                jnp.maximum(jnp.abs(td), jnp.float32(sqrt_eps)).astype(out_dtype))
        return jnp.concatenate(pieces).reshape(orig_shape)

    # ---------------------- 'mean' / 'sum' --------------------------------
    total = jnp.float32(0.0)

    if rows > 0:
        block_rows = _pick_block_rows(rows, BLOCK_ROWS_REDUCE)
        total_tiles = _cdiv(rows, block_rows)
        # Unconditional 2-way split whenever there is more than one tile so
        # both v7x TensorCores get work; on single-core chips it is just a
        # 2-step outer loop.  Phantom tiles (odd tile counts) are clamped in
        # the index_map and zeroed by the in-kernel row mask.
        n_split = 2 if total_tiles >= 2 else 1
        tiles_per_split = _cdiv(total_tiles, n_split)
        last_tile = total_tiles - 1

        def in_index(s, k, _t=tiles_per_split, _last=last_tile):
            return (jnp.minimum(s * _t + k, _last), 0)

        in_spec = pl.BlockSpec((block_rows, LANE), in_index)
        out_spec = pl.BlockSpec((8, LANE), lambda s, k: (s, 0))

        partials = pl.pallas_call(
            functools.partial(
                _rmse_partial_kernel,
                block_rows=block_rows,
                tiles_per_split=tiles_per_split,
                valid_rows=rows,
            ),
            out_shape=jax.ShapeDtypeStruct((8 * n_split, LANE), jnp.float32),
            grid_spec=pltpu.PrefetchScalarGridSpec(
                num_scalar_prefetch=0,
                grid=(n_split, tiles_per_split),
                in_specs=[in_spec, in_spec],
                out_specs=out_spec,
            ),
            compiler_params=pltpu.CompilerParams(
                dimension_semantics=("parallel", "arbitrary"),
                vmem_limit_bytes=VMEM_LIMIT_BYTES),
        )(yh_main, yt_main)
        total = total + jnp.sum(partials)

    if rem > 0:
        td = yh_tail.astype(jnp.float32) - yt_tail.astype(jnp.float32)
        total = total + jnp.sum(td * td)

    mse = total / jnp.float32(n) if reduction == "mean" else total
    return jnp.sqrt(jnp.maximum(mse, jnp.float32(eps))).astype(out_dtype)


if __name__ == "__main__":
    eps = 1e-8

    # --- primary small test: (2, 4, 16, 16), f32, all reductions ----------
    k1, k2 = jax.random.split(jax.random.PRNGKey(0))
    shape = (2, 4, 16, 16)
    y_hat = jax.random.normal(k1, shape, dtype=jnp.float32)
    y_true = jax.random.normal(k2, shape, dtype=jnp.float32)

    out = jax.block_until_ready(rmse_loss(y_hat, y_true, reduction="mean", eps=eps))
    ref = jnp.sqrt(jnp.maximum(jnp.mean((y_hat - y_true) ** 2), eps))
    assert jnp.allclose(out, ref, rtol=1e-5, atol=1e-6), (out, ref)

    out_sum = jax.block_until_ready(rmse_loss(y_hat, y_true, reduction="sum", eps=eps))
    ref_sum = jnp.sqrt(jnp.maximum(jnp.sum((y_hat - y_true) ** 2), eps))
    assert jnp.allclose(out_sum, ref_sum, rtol=1e-5, atol=1e-5), (out_sum, ref_sum)

    out_none = jax.block_until_ready(rmse_loss(y_hat, y_true, reduction="none", eps=eps))
    ref_none = jnp.sqrt(jnp.maximum((y_hat - y_true) ** 2, eps))
    assert out_none.shape == shape
    assert jnp.allclose(out_none, ref_none, rtol=1e-5, atol=1e-6)

    # --- bf16 inputs: in-kernel upcast ------------------------------------
    yh_bf = y_hat.astype(jnp.bfloat16)
    yt_bf = y_true.astype(jnp.bfloat16)
    out_bf = jax.block_until_ready(rmse_loss(yh_bf, yt_bf, reduction="mean", eps=eps))
    ref_bf = jnp.sqrt(jnp.maximum(
        jnp.mean((yh_bf.astype(jnp.float32) - yt_bf.astype(jnp.float32)) ** 2), eps))
    assert out_bf.dtype == jnp.bfloat16
    assert abs(float(out_bf) - float(ref_bf)) <= 1e-2 * abs(float(ref_bf)) + 1e-3

    # --- odd size (not a multiple of 128): kernel main + jnp tail ----------
    k3, k4 = jax.random.split(jax.random.PRNGKey(1))
    a = jax.random.normal(k3, (37, 55), dtype=jnp.float32)
    b = jax.random.normal(k4, (37, 55), dtype=jnp.float32)
    o = jax.block_until_ready(rmse_loss(a, b, reduction="mean", eps=eps))
    r = jnp.sqrt(jnp.maximum(jnp.mean((a - b) ** 2), eps))
    assert jnp.allclose(o, r, rtol=1e-5, atol=1e-6), (o, r)
    on = jax.block_until_ready(rmse_loss(a, b, reduction="none", eps=eps))
    rn = jnp.sqrt(jnp.maximum((a - b) ** 2, eps))
    assert on.shape == a.shape and jnp.allclose(on, rn, rtol=1e-5, atol=1e-6)

    # --- multi-tile: 2-way parallel split + masked partial last tile -------
    k5, k6 = jax.random.split(jax.random.PRNGKey(2))
    a = jax.random.normal(k5, (9000, 128), dtype=jnp.float32)
    b = jax.random.normal(k6, (9000, 128), dtype=jnp.float32)
    o = jax.block_until_ready(rmse_loss(a, b, reduction="mean", eps=eps))
    r = jnp.sqrt(jnp.maximum(jnp.mean((a - b) ** 2), eps))
    assert jnp.allclose(o, r, rtol=1e-4, atol=1e-6), (o, r)

    print("KERNEL_OK")
</pallas_src>

<mosaic_0001>
module attributes {stable_mosaic.version = 11 : i64} {
  func.func @_rmse_partial_kernel(%arg0: i32, %arg1: i32, %arg2: memref<16x128xf32, #tpu.memory_space<vmem>>, %arg3: memref<16x128xf32, #tpu.memory_space<vmem>>, %arg4: memref<8x128xf32, #tpu.memory_space<vmem>>) attributes {dimension_semantics = [#tpu.dimension_semantics<parallel>, #tpu.dimension_semantics<arbitrary>], iteration_bounds = array<i64: 1, 1>, scalar_prefetch = 0 : i64, scratch_operands = 0 : i64, tpu.core_type = #tpu.core_type<tc>, window_params = [{transform_indices = @transform_0, window_bounds = array<i64: 16, 128>}, {transform_indices = @transform_1, window_bounds = array<i64: 16, 128>}, {transform_indices = @transform_2, window_bounds = array<i64: 8, 128>}]} {
    %c0_i32 = arith.constant 0 : i32
    %0 = arith.cmpi eq, %arg1, %c0_i32 : i32
    %1 = arith.extui %0 : i1 to i32
    %c0_i32_0 = arith.constant 0 : i32
    %2 = arith.cmpi ne, %1, %c0_i32_0 : i32
    scf.if %2 {
      %cst = arith.constant 0.000000e+00 : f32
      %17 = vector.broadcast %cst : f32 to vector<8x128xf32>
      %c0_8 = arith.constant 0 : index
      %c0_9 = arith.constant 0 : index
      %18 = vector.load %arg4[%c0_8, %c0_9] : memref<8x128xf32, #tpu.memory_space<vmem>>, vector<8x128xf32>
      tpu.vector_store %arg4[%c0_8, %c0_9], %17 {strides = array<i32>} : memref<8x128xf32, #tpu.memory_space<vmem>>, vector<8x128xf32>,
    } else {
    }
    %c0 = arith.constant 0 : index
    %c0_1 = arith.constant 0 : index
    %3 = vector.load %arg2[%c0, %c0_1] : memref<16x128xf32, #tpu.memory_space<vmem>>, vector<16x128xf32>
    %c0_2 = arith.constant 0 : index
    %c0_3 = arith.constant 0 : index
    %4 = vector.load %arg3[%c0_2, %c0_3] : memref<16x128xf32, #tpu.memory_space<vmem>>, vector<16x128xf32>
    %5 = arith.subf %3, %4 : vector<16x128xf32>
    %6 = arith.mulf %5, %5 : vector<16x128xf32>
    %c1_i32 = arith.constant 1 : i32
    %7 = arith.muli %arg0, %c1_i32 : i32
    %8 = arith.addi %7, %arg1 : i32
    %c1_i32_4 = arith.constant 1 : i32
    %9 = arith.addi %8, %c1_i32_4 : i32
    %c16_i32 = arith.constant 16 : i32
    %10 = arith.muli %9, %c16_i32 : i32
    %c16_i32_5 = arith.constant 16 : i32
    %11 = arith.cmpi sgt, %10, %c16_i32_5 : i32
    %12 = arith.extui %11 : i1 to i32
    %c0_i32_6 = arith.constant 0 : i32
    %13 = arith.cmpi ne, %12, %c0_i32_6 : i32
    scf.if %13 {
      %c16_i32_8 = arith.constant 16 : i32
      %17 = arith.muli %8, %c16_i32_8 : i32
      %18 = tpu.iota {dimensions = array<i32: 0>} : vector<16x128xi32>
      %19 = vector.broadcast %17 : i32 to vector<16x128xi32>
      %20 = arith.addi %19, %18 : vector<16x128xi32>
      %c0_9 = arith.constant 0 : index
      %c0_10 = arith.constant 0 : index
      %21 = vector.load %arg4[%c0_9, %c0_10] : memref<8x128xf32, #tpu.memory_space<vmem>>, vector<8x128xf32>
      %c16_i32_11 = arith.constant 16 : i32
      %22 = vector.broadcast %c16_i32_11 : i32 to vector<16x128xi32>
      %23 = arith.cmpi slt, %20, %22 : vector<16x128xi32>
      %cst = arith.constant 0.000000e+00 : f32
      %24 = vector.broadcast %cst : f32 to vector<16x128xf32>
      %25 = arith.select %23, %6, %24 : vector<16x128xi1>, vector<16x128xf32>
      %26 = vector.shape_cast %25 : vector<16x128xf32> to vector<2x8x128xf32>
      %cst_12 = arith.constant dense<0.000000e+00> : vector<8x128xf32>
      %27 = vector.multi_reduction <add>, %26, %cst_12 [0] : vector<2x8x128xf32> to vector<8x128xf32>
      %28 = arith.addf %21, %27 : vector<8x128xf32>
      %c0_13 = arith.constant 0 : index
      %c0_14 = arith.constant 0 : index
      %29 = vector.load %arg4[%c0_13, %c0_14] : memref<8x128xf32, #tpu.memory_space<vmem>>, vector<8x128xf32>
      tpu.vector_store %arg4[%c0_13, %c0_14], %28 {strides = array<i32>} : memref<8x128xf32, #tpu.memory_space<vmem>>, vector<8x128xf32>,
    } else {
    }
    %true = arith.constant true
    %14 = arith.xori %11, %true : i1
    %15 = arith.extui %14 : i1 to i32
    %c0_i32_7 = arith.constant 0 : i32
    %16 = arith.cmpi ne, %15, %c0_i32_7 : i32
    scf.if %16 {
      %c0_8 = arith.constant 0 : index
      %c0_9 = arith.constant 0 : index
      %17 = vector.load %arg4[%c0_8, %c0_9] : memref<8x128xf32, #tpu.memory_space<vmem>>, vector<8x128xf32>
      %18 = vector.shape_cast %6 : vector<16x128xf32> to vector<2x8x128xf32>
      %cst = arith.constant dense<0.000000e+00> : vector<8x128xf32>
      %19 = vector.multi_reduction <add>, %18, %cst [0] : vector<2x8x128xf32> to vector<8x128xf32>
      %20 = arith.addf %17, %19 : vector<8x128xf32>
      %c0_10 = arith.constant 0 : index
      %c0_11 = arith.constant 0 : index
      %21 = vector.load %arg4[%c0_10, %c0_11] : memref<8x128xf32, #tpu.memory_space<vmem>>, vector<8x128xf32>
      tpu.vector_store %arg4[%c0_10, %c0_11], %20 {strides = array<i32>} : memref<8x128xf32, #tpu.memory_space<vmem>>, vector<8x128xf32>,
    } else {
    }
    return
  }
  func.func @transform_0(%arg0: i32, %arg1: i32) -> (i32, i32) {
    %c1_i32 = arith.constant 1 : i32
    %0 = arith.muli %arg0, %c1_i32 : i32
    %1 = arith.addi %0, %arg1 : i32
    %c0_i32 = arith.constant 0 : i32
    %2 = arith.minsi %1, %c0_i32 : i32
    %c0_i32_0 = arith.constant 0 : i32
    %c0_i32_1 = arith.constant 0 : i32
    return %2, %c0_i32_0 : i32, i32
  }
  func.func @transform_1(%arg0: i32, %arg1: i32) -> (i32, i32) {
    %c1_i32 = arith.constant 1 : i32
    %0 = arith.muli %arg0, %c1_i32 : i32
    %1 = arith.addi %0, %arg1 : i32
    %c0_i32 = arith.constant 0 : i32
    %2 = arith.minsi %1, %c0_i32 : i32
    %c0_i32_0 = arith.constant 0 : i32
    %c0_i32_1 = arith.constant 0 : i32
    return %2, %c0_i32_0 : i32, i32
  }
  func.func @transform_2(%arg0: i32, %arg1: i32) -> (i32, i32) {
    %c0_i32 = arith.constant 0 : i32
    %c0_i32_0 = arith.constant 0 : i32
    return %arg0, %c0_i32 : i32, i32
  }
}

</mosaic_0001>

<bundles_post_ra>
// kernel: tpu_custom_call.1
= control target key start
LH: loop header
LB: loop body
LE: loop exit
PB: predicated region body
PF: predicated region fallthrough
CT: control target
= control target key end

     0   :  { %7 = vsyncpa [#allocation3], 0  ;;  %s257_s0 = inlined_call_operand.hbm [shape: f32[16,128], index: 0, kind: input, shape index: {}]   ;;  %s258_s1 = inlined_call_operand.hbm [shape: f32[16,128], index: 1, kind: input, shape index: {}]   ;;  %s259_s2 = inlined_call_operand.hbm [shape: f32[8,128], index: 2, kind: output, shape index: {}]  }
   0x1   :  { %8 = vsyncpa [#allocation6], 0 }
   0x2   :  { %9 = vsyncpa [#allocation4], 0  ;;  %s201_s9 = smov [#allocation2]   ;;  %s129_s13 = scalar_lea.hbm %s257_s0, 256 }
   0x3   :  { %s21_s10 = sshll.u32 %s201_s9, 4  ;;  %p130_p0 = scmp.ne.s32.totalorder %s257_s0, %s129_s13  ;;  %s22_s10 = int_to_ptr.vmem [resolvable:$true] %s21_s10 }
   0x4   :  { %p133_p1 = scmp.lt.u32.totalorder %s129_s13, %s257_s0 }
   0x6   :  { %p135_p2 = pnand %p133_p1, %p130_p0 }
   0x8   :  { %138 = shalt.err (!%p135_p2)
}
   0x9   :  { %s139_s18 = scalar_lea.vmem %s22_s10, 256  ;;  %p144_p4 = scmp.lt.s32.totalorder %s22_s10, %s22_s10 }
   0xa   :  { %p140_p3 = scmp.ne.s32.totalorder %s22_s10, %s139_s18  ;;  %p145_p5 = scmp.lt.s32.totalorder %s139_s18, %s139_s18 }
   0xc   :  { %p146_p6 = por %p145_p5, %p144_p4 }
   0xe   :  { %p147_p7 = pnand %p146_p6, %p140_p3 }
  0x10   :  { %150 = shalt.err (!%p147_p7)
}
  0x11   :  { %s202_s19 = smov 128   ;;  %s203_s20 = smov 8  }
  0x12   :  { %27 = dma.hbm_to_vmem [thread:$0]  %s257_s0, 256, %s22_s10, [#allocation3], %s202_s19, %s202_s19, %s203_s20  }
  0x13   :  { %s204_s23 = smov [#allocation5]   ;;  %s151_s27 = scalar_lea.hbm %s258_s1, 256 }
  0x14   :  { %s39_s24 = sshll.u32 %s204_s23, 4  ;;  %p152_p8 = scmp.ne.s32.totalorder %s258_s1, %s151_s27  ;;  %s40_s24 = int_to_ptr.vmem [resolvable:$true] %s39_s24 }
  0x15   :  { %p155_p9 = scmp.lt.u32.totalorder %s151_s27, %s258_s1 }
  0x17   :  { %p157_p10 = pnand %p155_p9, %p152_p8 }
  0x19   :  { %160 = shalt.err (!%p157_p10)
}
  0x1a   :  { %s161_s4 = scalar_lea.vmem %s40_s24, 256  ;;  %p166_p12 = scmp.lt.s32.totalorder %s40_s24, %s40_s24 }
  0x1b   :  { %p162_p11 = scmp.ne.s32.totalorder %s40_s24, %s161_s4  ;;  %p167_p13 = scmp.lt.s32.totalorder %s161_s4, %s161_s4 }
  0x1d   :  { %p168_p0 = por %p167_p13, %p166_p12 }
  0x1f   :  { %p169_p1 = pnand %p168_p0, %p162_p11 }
  0x21   :  { %172 = shalt.err (!%p169_p1)
}
  0x22   :  { %45 = dma.hbm_to_vmem [thread:$0]  %s258_s1, 256, %s40_s24, [#allocation6], %s202_s19, %s202_s19, %s203_s20  }
  0x23   :  { %195 = dma.done.wait [#allocation3], 256  }
  0x24   :  { %196 = vsyncadd [#allocation3], 4294967040 }
  0x25   :  { %197 = dma.done.wait [#allocation6], 256  }
  0x26   :  { %198 = vsyncadd [#allocation6], 4294967040  ;;  %v65_v0 = vld [vmem:[#allocation2] sm:$0xff]  ;;  %v66_v1 = vld [vmem:[#allocation2 + $0x8] sm:$0xff]  ;;  %s205_s6 = smov [#allocation7]  }
  0x27   :  { %v67_v2 = vld [vmem:[#allocation5] sm:$0xff]  ;;  %v68_v3 = vld [vmem:[#allocation5 + $0x8] sm:$0xff]  ;;  %s109_s7 = sshll.u32 %s205_s6, 4  ;;  %s110_s7 = int_to_ptr.vmem [resolvable:$true] %s109_s7 }
  0x28   :  { %v69_v4 = vsub.f32 %v65_v0, %v67_v2  ;;  %v70_v5 = vsub.f32 %v66_v1, %v68_v3  ;;  %s173_s8 = scalar_lea.vmem %s110_s7, 128  ;;  %p178_p3 = scmp.lt.s32.totalorder %s110_s7, %s110_s7 }
  0x29   :  { %p174_p2 = scmp.ne.s32.totalorder %s110_s7, %s173_s8  ;;  %p179_p4 = scmp.lt.s32.totalorder %s173_s8, %s173_s8 }
  0x2a   :  { %v71_v6 = vmul.f32 %v69_v4, %v69_v4  ;;  %v72_v7 = vmul.f32 %v70_v5, %v70_v5 }
  0x2b   :  { %p180_p5 = por %p179_p4, %p178_p3 }
  0x2c   :  { %v100_v8 = vadd.f32 %v72_v7, %v71_v6 }
  0x2d   :  { %p181_p6 = pnand %p180_p5, %p174_p2 }
  0x2e   :  { %102 = vst [vmem:[#allocation7] sm:$0xff] %v100_v8 }
  0x2f   :  { %184 = shalt.err (!%p181_p6)
}
  0x30   :  { %s185_s10 = scalar_lea.hbm %s259_s2, 128 }
  0x31   :  { %p186_p7 = scmp.ne.s32.totalorder %s259_s2, %s185_s10  ;;  %p189_p8 = scmp.lt.u32.totalorder %s185_s10, %s259_s2 }
  0x33   :  { %p191_p9 = pnand %p189_p8, %p186_p7 }
  0x35   :  { %194 = shalt.err (!%p191_p9)
}
  0x36   :  { %112 = dma.vmem_to_hbm [thread:$0]  %s110_s7, 128, %s259_s2, [#allocation4]  }
  0x37   :  { %199 = dma.done.wait [#allocation4], 128  }
  0x38   :  { %200 = vsyncadd [#allocation4], 4294967168 }
  0x39   :  { %116 = vsyncpa [#allocation3], 1 }
  0x3a   :  { %117 = vsyncpa [#allocation6], 1 }
  0x3b   :  { %118 = vsyncpa [#allocation4], 1 }

</bundles_post_ra>
